<compile_context>
chip_gen: v5e
topology: v5e:2x2
jax: 0.10.0
libtpu: 0.0.40
codegen_flags: <defaults>
</compile_context>

<pallas_src>
import functools

import jax
import jax.numpy as jnp
from jax.experimental import pallas as pl
from jax.experimental.pallas import tpu as pltpu


def _stats_kernel(x_ref, gamma_ref, beta_ref, scale_ref, shift_ref,
                  sum_ref, sq_ref, *, inv_count, eps):
    # x_ref:     (1, C, hw_tile)   -- C on sublanes, H*W tile on lanes
    # gamma_ref: (1, C)  beta_ref: (1, C)
    # scale_ref/shift_ref: (1, C) outputs (resident across the whole grid)
    # sum_ref/sq_ref: (1, C) f32 scratch accumulators
    first = (pl.program_id(0) == 0) & (pl.program_id(1) == 0)
    last = ((pl.program_id(0) == pl.num_programs(0) - 1)
            & (pl.program_id(1) == pl.num_programs(1) - 1))

    @pl.when(first)
    def _():
        sum_ref[...] = jnp.zeros_like(sum_ref)
        sq_ref[...] = jnp.zeros_like(sq_ref)

    x = x_ref[...].astype(jnp.float32)            # (1, C, hw_tile)
    # Fused single-pass statistics: per-channel sum and sum of squares
    # (lane-axis reduction goes to the XLU; accumulation stays in f32).
    sum_ref[...] += jnp.sum(x, axis=2)            # (1, C)
    sq_ref[...] += jnp.sum(x * x, axis=2)         # (1, C)

    @pl.when(last)
    def _():
        mean = sum_ref[...] * inv_count
        var = sq_ref[...] * inv_count - mean * mean   # biased variance
        inv_std = jax.lax.rsqrt(var + eps)
        scale = gamma_ref[...].astype(jnp.float32) * inv_std
        scale_ref[...] = scale
        shift_ref[...] = beta_ref[...].astype(jnp.float32) - mean * scale


def _apply_kernel(x_ref, scale_ref, shift_ref, o_ref):
    # x_ref: (1, C, hw_tile); scale/shift: (1, C) broadcast along lanes.
    x = x_ref[...].astype(jnp.float32)
    scale = scale_ref[...][:, :, None]            # (1, C, 1)
    shift = shift_ref[...][:, :, None]            # (1, C, 1)
    o_ref[...] = (x * scale + shift).astype(o_ref.dtype)


def _pick_hw_tile(hw, c, itemsize, vmem_budget_bytes=2 * 1024 * 1024):
    """Largest lane-aligned divisor of hw keeping one block under the budget."""
    if hw % 128 != 0:
        # Lanes get padded to 128 by Mosaic; keep the whole row in one block.
        return hw
    cap = max(128, vmem_budget_bytes // max(1, c * itemsize))
    cap = (cap // 128) * 128
    tile = min(hw, cap)
    while hw % tile != 0:
        tile -= 128
    return tile


def conditional_batch_norm(x, d, gammas, betas, eps=1e-5):
    """Training-mode BatchNorm2d of domain `d` applied to NCHW input `x`.

    gammas, betas: (n_domains, C) per-domain affine parameters.
    """
    N, C, H, W = x.shape
    HW = H * W
    # Free contiguous view of NCHW -> (N, C, H*W); no transposes.
    x3 = x.reshape(N, C, HW)

    # Tiny (C-sized) per-domain parameter gather stays in the wrapper.
    gamma = jnp.reshape(gammas[d], (1, C)).astype(jnp.float32)
    beta = jnp.reshape(betas[d], (1, C)).astype(jnp.float32)

    hw_tile = _pick_hw_tile(HW, C, jnp.dtype(x.dtype).itemsize)
    n_tiles = HW // hw_tile
    inv_count = 1.0 / float(N * HW)

    # Pass 1: per-channel statistics -> fused scale/shift (accumulator grid).
    scale, shift = pl.pallas_call(
        functools.partial(_stats_kernel, inv_count=inv_count, eps=float(eps)),
        out_shape=(jax.ShapeDtypeStruct((1, C), jnp.float32),
                   jax.ShapeDtypeStruct((1, C), jnp.float32)),
        grid=(N, n_tiles),
        in_specs=[
            pl.BlockSpec((1, C, hw_tile), lambda n, t: (n, 0, t)),
            pl.BlockSpec((1, C), lambda n, t: (0, 0)),
            pl.BlockSpec((1, C), lambda n, t: (0, 0)),
        ],
        out_specs=(
            pl.BlockSpec((1, C), lambda n, t: (0, 0)),
            pl.BlockSpec((1, C), lambda n, t: (0, 0)),
        ),
        scratch_shapes=[
            pltpu.VMEM((1, C), jnp.float32),
            pltpu.VMEM((1, C), jnp.float32),
        ],
        compiler_params=pltpu.CompilerParams(
            dimension_semantics=("arbitrary", "arbitrary")),
    )(x3, gamma, beta)

    # Pass 2: pipelined, lane-dense elementwise normalize + affine.
    out3 = pl.pallas_call(
        _apply_kernel,
        out_shape=jax.ShapeDtypeStruct((N, C, HW), x.dtype),
        grid=(N, n_tiles),
        in_specs=[
            pl.BlockSpec((1, C, hw_tile), lambda n, t: (n, 0, t)),
            pl.BlockSpec((1, C), lambda n, t: (0, 0)),
            pl.BlockSpec((1, C), lambda n, t: (0, 0)),
        ],
        out_specs=pl.BlockSpec((1, C, hw_tile), lambda n, t: (n, 0, t)),
        compiler_params=pltpu.CompilerParams(
            dimension_semantics=("parallel", "parallel")),
    )(x3, scale, shift)

    return out3.reshape(N, C, H, W)


def _reference_bn(x, d, gammas, betas, eps=1e-5):
    # Pure-JAX reference of training-mode BatchNorm2d (NCHW).
    mean = jnp.mean(x, axis=(0, 2, 3), keepdims=True)
    var = jnp.mean((x - mean) ** 2, axis=(0, 2, 3), keepdims=True)
    g = gammas[d].reshape(1, -1, 1, 1)
    b = betas[d].reshape(1, -1, 1, 1)
    return (x - mean) / jnp.sqrt(var + eps) * g + b


if __name__ == "__main__":
    key = jax.random.PRNGKey(0)
    k_x, k_g, k_b = jax.random.split(key, 3)

    # Small shapes consistent with the module: batch=2, channels=4, spatial=16.
    N, C, H, W = 2, 4, 16, 16
    n_domains = 3
    domain = 1

    x = jax.random.normal(k_x, (N, C, H, W), dtype=jnp.float32)

    # Deterministic per-domain affine params (PyTorch inits weight=1, bias=0;
    # perturb deterministically so the affine path is actually exercised).
    gammas = 1.0 + 0.1 * jax.random.normal(k_g, (n_domains, C), dtype=jnp.float32)
    betas = 0.1 * jax.random.normal(k_b, (n_domains, C), dtype=jnp.float32)

    # TODO(synk): running_mean/running_var buffer updates (momentum tracking)
    # are stateful side effects of nn.BatchNorm2d and are not reproduced;
    # training-mode forward output does not depend on them.

    out = conditional_batch_norm(x, domain, gammas, betas)
    out = jax.block_until_ready(out)

    ref = _reference_bn(x, domain, gammas, betas)
    assert out.shape == (N, C, H, W)
    err = float(jnp.max(jnp.abs(out - ref)))
    assert err < 1e-4, f"mismatch vs reference: {err}"

    print("KERNEL_OK")
</pallas_src>

<mosaic_0001>
module attributes {stable_mosaic.version = 11 : i64} {
  func.func @_stats_kernel(%arg0: i32, %arg1: i32, %arg2: memref<1x4x256xf32, #tpu.memory_space<vmem>>, %arg3: memref<1x4xf32, #tpu.memory_space<vmem>>, %arg4: memref<1x4xf32, #tpu.memory_space<vmem>>, %arg5: memref<1x4xf32, #tpu.memory_space<vmem>>, %arg6: memref<1x4xf32, #tpu.memory_space<vmem>>, %arg7: memref<1x4xf32, #tpu.memory_space<vmem>>, %arg8: memref<1x4xf32, #tpu.memory_space<vmem>>) attributes {dimension_semantics = [#tpu.dimension_semantics<arbitrary>, #tpu.dimension_semantics<arbitrary>], iteration_bounds = array<i64: 2, 1>, scalar_prefetch = 0 : i64, scratch_operands = 2 : i64, tpu.core_type = #tpu.core_type<tc>, window_params = [{transform_indices = @transform_0, window_bounds = array<i64: 1, 4, 256>}, {pipeline_mode = #tpu.pipeline_mode<synchronous>, transform_indices = @transform_1, window_bounds = array<i64: 1, 4>}, {pipeline_mode = #tpu.pipeline_mode<synchronous>, transform_indices = @transform_2, window_bounds = array<i64: 1, 4>}, {pipeline_mode = #tpu.pipeline_mode<synchronous>, transform_indices = @transform_3, window_bounds = array<i64: 1, 4>}, {pipeline_mode = #tpu.pipeline_mode<synchronous>, transform_indices = @transform_4, window_bounds = array<i64: 1, 4>}]} {
    %c0_i32 = arith.constant 0 : i32
    %0 = arith.cmpi eq, %arg0, %c0_i32 : i32
    %c0_i32_0 = arith.constant 0 : i32
    %1 = arith.cmpi eq, %arg1, %c0_i32_0 : i32
    %2 = arith.andi %0, %1 : i1
    %c1_i32 = arith.constant 1 : i32
    %3 = arith.cmpi eq, %arg0, %c1_i32 : i32
    %c0_i32_1 = arith.constant 0 : i32
    %4 = arith.cmpi eq, %arg1, %c0_i32_1 : i32
    %5 = arith.andi %3, %4 : i1
    %6 = arith.extui %2 : i1 to i32
    %c0_i32_2 = arith.constant 0 : i32
    %7 = arith.cmpi ne, %6, %c0_i32_2 : i32
    scf.if %7 {
      %cst_15 = arith.constant 0.000000e+00 : f32
      %20 = vector.broadcast %cst_15 : f32 to vector<1x4xf32>
      %c0_16 = arith.constant 0 : index
      %c0_17 = arith.constant 0 : index
      %21 = vector.load %arg7[%c0_16, %c0_17] : memref<1x4xf32, #tpu.memory_space<vmem>>, vector<1x4xf32>
      tpu.vector_store %arg7[%c0_16, %c0_17], %20 {strides = array<i32>} : memref<1x4xf32, #tpu.memory_space<vmem>>, vector<1x4xf32>,
      %cst_18 = arith.constant 0.000000e+00 : f32
      %22 = vector.broadcast %cst_18 : f32 to vector<1x4xf32>
      %c0_19 = arith.constant 0 : index
      %c0_20 = arith.constant 0 : index
      %23 = vector.load %arg8[%c0_19, %c0_20] : memref<1x4xf32, #tpu.memory_space<vmem>>, vector<1x4xf32>
      tpu.vector_store %arg8[%c0_19, %c0_20], %22 {strides = array<i32>} : memref<1x4xf32, #tpu.memory_space<vmem>>, vector<1x4xf32>,
    } else {
    }
    %c0 = arith.constant 0 : index
    %c0_3 = arith.constant 0 : index
    %c0_4 = arith.constant 0 : index
    %8 = vector.load %arg2[%c0, %c0_3, %c0_4] : memref<1x4x256xf32, #tpu.memory_space<vmem>>, vector<1x4x256xf32>
    %c0_5 = arith.constant 0 : index
    %c0_6 = arith.constant 0 : index
    %9 = vector.load %arg7[%c0_5, %c0_6] : memref<1x4xf32, #tpu.memory_space<vmem>>, vector<1x4xf32>
    %cst = arith.constant dense<0.000000e+00> : vector<1x4xf32>
    %10 = vector.multi_reduction <add>, %8, %cst [2] : vector<1x4x256xf32> to vector<1x4xf32>
    %11 = arith.addf %9, %10 : vector<1x4xf32>
    %c0_7 = arith.constant 0 : index
    %c0_8 = arith.constant 0 : index
    %12 = vector.load %arg7[%c0_7, %c0_8] : memref<1x4xf32, #tpu.memory_space<vmem>>, vector<1x4xf32>
    tpu.vector_store %arg7[%c0_7, %c0_8], %11 {strides = array<i32>} : memref<1x4xf32, #tpu.memory_space<vmem>>, vector<1x4xf32>,
    %c0_9 = arith.constant 0 : index
    %c0_10 = arith.constant 0 : index
    %13 = vector.load %arg8[%c0_9, %c0_10] : memref<1x4xf32, #tpu.memory_space<vmem>>, vector<1x4xf32>
    %14 = arith.mulf %8, %8 : vector<1x4x256xf32>
    %cst_11 = arith.constant dense<0.000000e+00> : vector<1x4xf32>
    %15 = vector.multi_reduction <add>, %14, %cst_11 [2] : vector<1x4x256xf32> to vector<1x4xf32>
    %16 = arith.addf %13, %15 : vector<1x4xf32>
    %c0_12 = arith.constant 0 : index
    %c0_13 = arith.constant 0 : index
    %17 = vector.load %arg8[%c0_12, %c0_13] : memref<1x4xf32, #tpu.memory_space<vmem>>, vector<1x4xf32>
    tpu.vector_store %arg8[%c0_12, %c0_13], %16 {strides = array<i32>} : memref<1x4xf32, #tpu.memory_space<vmem>>, vector<1x4xf32>,
    %18 = arith.extui %5 : i1 to i32
    %c0_i32_14 = arith.constant 0 : i32
    %19 = arith.cmpi ne, %18, %c0_i32_14 : i32
    scf.if %19 {
      %c0_15 = arith.constant 0 : index
      %c0_16 = arith.constant 0 : index
      %20 = vector.load %arg7[%c0_15, %c0_16] : memref<1x4xf32, #tpu.memory_space<vmem>>, vector<1x4xf32>
      %cst_17 = arith.constant 0.001953125 : f32
      %21 = vector.broadcast %cst_17 : f32 to vector<1x4xf32>
      %22 = arith.mulf %20, %21 : vector<1x4xf32>
      %c0_18 = arith.constant 0 : index
      %c0_19 = arith.constant 0 : index
      %23 = vector.load %arg8[%c0_18, %c0_19] : memref<1x4xf32, #tpu.memory_space<vmem>>, vector<1x4xf32>
      %cst_20 = arith.constant 0.001953125 : f32
      %24 = vector.broadcast %cst_20 : f32 to vector<1x4xf32>
      %25 = arith.mulf %23, %24 : vector<1x4xf32>
      %26 = arith.mulf %22, %22 : vector<1x4xf32>
      %27 = arith.subf %25, %26 : vector<1x4xf32>
      %cst_21 = arith.constant 9.99999974E-6 : f32
      %28 = vector.broadcast %cst_21 : f32 to vector<1x4xf32>
      %29 = arith.addf %27, %28 : vector<1x4xf32>
      %30 = math.rsqrt %29 : vector<1x4xf32>
      %c0_22 = arith.constant 0 : index
      %c0_23 = arith.constant 0 : index
      %31 = vector.load %arg3[%c0_22, %c0_23] : memref<1x4xf32, #tpu.memory_space<vmem>>, vector<1x4xf32>
      %32 = arith.mulf %31, %30 : vector<1x4xf32>
      %c0_24 = arith.constant 0 : index
      %c0_25 = arith.constant 0 : index
      %33 = vector.load %arg5[%c0_24, %c0_25] : memref<1x4xf32, #tpu.memory_space<vmem>>, vector<1x4xf32>
      tpu.vector_store %arg5[%c0_24, %c0_25], %32 {strides = array<i32>} : memref<1x4xf32, #tpu.memory_space<vmem>>, vector<1x4xf32>,
      %c0_26 = arith.constant 0 : index
      %c0_27 = arith.constant 0 : index
      %34 = vector.load %arg4[%c0_26, %c0_27] : memref<1x4xf32, #tpu.memory_space<vmem>>, vector<1x4xf32>
      %35 = arith.mulf %22, %32 : vector<1x4xf32>
      %36 = arith.subf %34, %35 : vector<1x4xf32>
      %c0_28 = arith.constant 0 : index
      %c0_29 = arith.constant 0 : index
      %37 = vector.load %arg6[%c0_28, %c0_29] : memref<1x4xf32, #tpu.memory_space<vmem>>, vector<1x4xf32>
      tpu.vector_store %arg6[%c0_28, %c0_29], %36 {strides = array<i32>} : memref<1x4xf32, #tpu.memory_space<vmem>>, vector<1x4xf32>,
    } else {
    }
    return
  }
  func.func @transform_0(%arg0: i32, %arg1: i32) -> (i32, i32, i32) {
    %c0_i32 = arith.constant 0 : i32
    %c0_i32_0 = arith.constant 0 : i32
    return %arg0, %c0_i32, %arg1 : i32, i32, i32
  }
  func.func @transform_1(%arg0: i32, %arg1: i32) -> (i32, i32) {
    %c0_i32 = arith.constant 0 : i32
    %c0_i32_0 = arith.constant 0 : i32
    %c0_i32_1 = arith.constant 0 : i32
    return %c0_i32, %c0_i32_0 : i32, i32
  }
  func.func @transform_2(%arg0: i32, %arg1: i32) -> (i32, i32) {
    %c0_i32 = arith.constant 0 : i32
    %c0_i32_0 = arith.constant 0 : i32
    %c0_i32_1 = arith.constant 0 : i32
    return %c0_i32, %c0_i32_0 : i32, i32
  }
  func.func @transform_3(%arg0: i32, %arg1: i32) -> (i32, i32) {
    %c0_i32 = arith.constant 0 : i32
    %c0_i32_0 = arith.constant 0 : i32
    %c0_i32_1 = arith.constant 0 : i32
    return %c0_i32, %c0_i32_0 : i32, i32
  }
  func.func @transform_4(%arg0: i32, %arg1: i32) -> (i32, i32) {
    %c0_i32 = arith.constant 0 : i32
    %c0_i32_0 = arith.constant 0 : i32
    %c0_i32_1 = arith.constant 0 : i32
    return %c0_i32, %c0_i32_0 : i32, i32
  }
}

</mosaic_0001>

<bundles_post_ra>
// kernel: tpu_custom_call.1
= control target key start
LH: loop header
LB: loop body
LE: loop exit
PB: predicated region body
PF: predicated region fallthrough
CT: control target
= control target key end

     0   :  { %10 = vsyncpa [#allocation5], 0  ;;  %s912_s0 = inlined_call_operand.hbm [shape: f32[2,4,256], index: 0, kind: input, shape index: {}]   ;;  %s913_s1 = inlined_call_operand.hbm [shape: f32[1,4], index: 1, kind: input, shape index: {}]   ;;  %s914_s2 = inlined_call_operand.vmem [shape: f32[1,4], index: 2, kind: input, shape index: {}]   ;;  %s915_s3 = inlined_call_operand.hbm [shape: f32[1,4], index: 3, kind: output, shape index: {0}]   ;;  %s916_s4 = inlined_call_operand.hbm [shape: f32[1,4], index: 4, kind: output, shape index: {1}]  }
   0x1   :  { %12 = vsyncpa [#allocation5 + $0x1], 0 }
   0x2   :  { %13 = vsyncpa [#allocation8], 0 }
   0x3   :  { %14 = vsyncpa [#allocation6], 0 }
   0x4   :  { %15 = vsyncpa [#allocation11], 0  ;;  %s765_s15 = smov 0   ;;  %s767_s16 = smov 0  }
   0x5   :  { %s769_s17 = smov 0   ;;  %s771_s18 = smov 0  }
   0x6   :  { %s773_s19 = smov 0   ;;  %s775_s20 = smov 0  }
   0x7 LB: > { %s448_s21 = sadd.s32 4294967295, %s733_s20   ;;  %p55_p0 = scmp.ne.s32.totalorder %s717_s16, %s713_s15  ;;  %s733_s20 = sphi %s775_s20, %s21_s20   ;;  %s729_s19 = sphi %s773_s19, %s926_s19   ;;  %s725_s18 = sphi %s771_s18, %s925_s18   ;;  %s721_s17 = sphi %s769_s17, %s924_s17   ;;  %s717_s16 = sphi %s767_s16, %s923_s16   ;;  %s713_s15 = sphi %s765_s15, %s922_s15  }
   0x8   : > { %p797_p1 = scmp.eq.s32.totalorder %s448_s21, 0  ;;  %p449_p2 = scmp.ge.s32.totalorder %s733_s20, 1 }
   0x9   : > { %p150_p3 = scmp.lt.s32.totalorder %s733_s20, 3  ;;  %s162_s26 = sshll.u32 %s913_s1, 4  ;;  %s163_s26 = int_to_ptr.hbm [resolvable:$true] %s162_s26 }
   0xa   : > { %p805_p4 = por %p797_p1, %p55_p0  ;;  %s735_s28 = smov [#allocation7]  }
   0xb   : > { %p812_p5 = pnand %p449_p2, %p150_p3  ;;  %s164_s29 = sshll.u32 %s735_s28, 4  ;;  %s165_s29 = int_to_ptr.vmem [resolvable:$true] %s164_s29 }
   0xc   : > { %s33_s30 = sadd.s32 1, %s729_s19  ;;  %p49_p9 = scmp.ne.s32.totalorder %s721_s17, %s717_s16 }
   0xd   : > { %p483_p6 = pneg %p812_p5  ;;  %p35_p8 = scmp.ge.s32.totalorder %s33_s30, 2 }
   0xe   : > { %p50_p10 = scmp.eq.s32.totalorder %s733_s20, 0  ;;  %s42_s5 = sadd.s32 1, %s721_s17 }
   0xf   : > { %p484_p7 = pnand %p483_p6, %p797_p1  ;;  %s928_s30 = smov (%p35_p8, %s33_s30), 0 }
  0x10   : > { %p827_p11 = por %p50_p10, %p49_p9  ;;  %s37_s7 = ssub.s32 %s729_s19, %s928_s30 }
  0x11   : > { %486 = dma.hbm_to_vmem [thread:$0]  (!%p484_p7), %s163_s26, 16, %s165_s29, [#allocation8]  }
  0x12   : > { %s178_s8 = sand.u32 1, %s721_s17   ;;  %p40_p12 = scmp.eq.s32.totalorder %s37_s7, 0 }
  0x13   : > { %p492_p13 = scmp.lt.s32.totalorder %s733_s20, 2  ;;  %s452_s9 = sshll.u32 %s178_s8, 3 }
  0x14   : > { %s466_s10 = sshll.u32 %s729_s19, 3  ;;  %s182_s24 = scalar_lea.vmem [#allocation4], %s452_s9 }
  0x15   : > { %s837_s11 = scalar_select %p40_p12, %s721_s17, %s42_s5  }
  0x16   : > { %s189_s14 = scalar_lea.hbm %s912_s0, %s466_s10  ;;  %s193_s25 = sshll.u32 %s182_s24, 4  ;;  %s194_s25 = int_to_ptr.vmem [resolvable:$true] %s193_s25 }
  0x17   : > { %s191_s15 = sshll.u32 %s189_s14, 4  ;;  %p488_p0 = pnand %p492_p13, %p827_p11  ;;  %s192_s15 = int_to_ptr.hbm [resolvable:$true] %s191_s15 }
  0x18   : > { %s179_s26 = scalar_lea.sflag [#allocation5], %s178_s8  ;;  %202 = sbr.rel (%p812_p5) target bundleno = 488 (0x1e8), region = 32 }
  0x19   : > { %490 = dma.hbm_to_vmem [thread:$0]  (!%p488_p0), %s192_s15, 128, %s194_s25, %s179_s26  }
  0x1a   : > { %s204_s28 = sand.u32 (!%p812_p5), 1, %s717_s16  }
  0x1b   : > { %s456_s29 = sshll.u32 (!%p812_p5), %s204_s28, 3  ;;  %s205_s5 = scalar_lea.sflag (!%p812_p5), [#allocation5], %s204_s28 }
  0x1c   : > { %s208_s7 = scalar_lea.vmem (!%p812_p5), [#allocation4], %s456_s29 }
  0x1d   : > { %696 = dma.done.wait (%p805_p4), %s205_s5, 128  }
  0x1e   : > { %698 = vsyncadd (%p805_p4), %s205_s5, 4294967168 }
  0x1f   : > { %700 = dma.done.wait (%p797_p1), [#allocation8], 16  }
  0x20   : > { %702 = vsyncadd (%p797_p1), [#allocation8], 4294967280  ;;  %p235_p2 = scmp.eq.s32.totalorder %s725_s18, 0  ;;  %p239_p3 = scmp.eq.s32.totalorder %s725_s18, 1 }
  0x21   : > { %vm244_vm0 = vcmask (%p235_p2), 24576   ;;  %v736_v0 = vmov (%p235_p2), 0.0  }
  0x22   : > { %243 = sbr.rel (!%p235_p2) target bundleno = 39 (0x27), region = 44  ;;  %245 = vst.msk [vmem:[#allocation2] sm:$0x1] (%p235_p2), %vm244_vm0, %v736_v0 }
  0x23   : > { %246 = vst.msk [vmem:[#allocation3] sm:$0x1] (%p235_p2), %vm244_vm0, %v736_v0 }
  0x27 PF: > { %v247_v1 = vld [vmem:[%s208_s7] sm:$0xff]  ;;  %vm255_vm1 = vcmask 1043456   ;;  %v737_v7 = vmov 0   ;;  %v277_v20 = vlaneseq  ;;  %vm282_vm2 = vcmask 24576   ;;  %v336_v49 = vld [vmem:[#allocation7] sm:$0x1] (%p239_p3) }
  0x28   : > { %250 = vst [vmem:[#allocation1] ss:$2 sm:$0xff] %v247_v1  ;;  %551 = vset.pattern.permute.xlu1 %v737_v7  ;;  %552 = vset.pattern.permute.xlu0 %v737_v7  ;;  %v285_v13 = vmul.f32 %v247_v1, %v247_v1  ;;  %v339_v52 = vld [vmem:[%s914_s2] sm:$0x1] (%p239_p3) }
  0x29   : > { %v278_v21 = vand.u32 127, %v277_v20  ;;  %v248_v22 = vld [vmem:[#allocation2] sm:$0x1] }
  0x2a   : > { %v284_v32 = vld [vmem:[#allocation3] sm:$0x1] }
  0x2f   : > { %v251_v2 = vld.sshfl [vmem:[#allocation1] sm:$0xff pattern:$0x75316420]  ;;  %v252_v3 = vld.sshfl [vmem:[#allocation1 + $0x8] sm:$0xff pattern:$0x75316420] }
  0x30   : > { %v256_v4 = vsel %vm255_vm1, %v251_v2, 0.0  ;;  %v257_v5 = vsel %vm255_vm1, %v252_v3, 0.0 }
  0x31   : > { %v258_v6 = vadd.f32 %v257_v5, %v256_v4 }
  0x33   : > { %259 = vadd.xlane.f32.xlu0 %v258_v6 }
  0xa6   : > { %v260_v8 = vpop.xlane.xlu0 %259 }
  0xa7   : > { %v262_v9 = vperm.slane %v260_v8, 0  ;;  %v263_v10 = vperm.slane %v260_v8, 1  ;;  %v264_v11 = vperm.slane %v260_v8, 2  ;;  %v265_v12 = vperm.slane %v260_v8, 3 }
  0xa9   : > { %266 = vst [vmem:[#allocation1] ss:$9 sm:$0xff] %v262_v9 }
  0xaa   : > { %268 = vst [vmem:[#allocation1 + $0x1] ss:$9 sm:$0xff] %v263_v10 }
  0xab   : > { %270 = vst [vmem:[#allocation1 + $0x2] ss:$9 sm:$0xff] %v264_v11 }
  0xac   : > { %272 = vst [vmem:[#allocation1 + $0x3] ss:$9 sm:$0xff] %v265_v12 }
  0xb3   : > { %v273_v14 = vld [vmem:[#allocation1] sm:$0xff] }
  0xb4   : > { %275 = vperm.xlu1 %551, %v273_v14   ;;  %287 = vst [vmem:[#allocation1] ss:$2 sm:$0xff] %v285_v13 }
  0xbb   : > { %v288_v15 = vld.sshfl [vmem:[#allocation1] sm:$0xff pattern:$0x75316420]  ;;  %v289_v16 = vld.sshfl [vmem:[#allocation1 + $0x8] sm:$0xff pattern:$0x75316420] }
  0xbc   : > { %v292_v17 = vsel %vm255_vm1, %v288_v15, 0.0  ;;  %v293_v18 = vsel %vm255_vm1, %v289_v16, 0.0 }
  0xbd   : > { %v294_v19 = vadd.f32 %v293_v18, %v292_v17 }
  0xbf   : > { %295 = vadd.xlane.f32.xlu0 %v294_v19 }
 0x126   : > { %v276_v23 = vpop.permute.xlu1 %275 }
 0x127   : > { %v279_v24 = vperm.slane %v276_v23, %v278_v21 }
 0x129   : > { %v281_v25 = vadd.f32 %v279_v24, %v248_v22 }
 0x12b   : > { %283 = vst.msk [vmem:[#allocation2] sm:$0x1] %vm282_vm2, %v281_v25 }
 0x132   : > { %v296_v26 = vpop.xlane.xlu0 %295  ;;  %v319_v36 = vld [vmem:[#allocation2] sm:$0x1] (%p239_p3) }
 0x133   : > { %v298_v27 = vperm.slane %v296_v26, 0  ;;  %v299_v28 = vperm.slane %v296_v26, 1  ;;  %v300_v29 = vperm.slane %v296_v26, 2  ;;  %v301_v30 = vperm.slane %v296_v26, 3 }
 0x134   : > { %v320_v38 = vmul.f32 (%p239_p3), 0.001953125, %v319_v36 }
 0x135   : > { %302 = vst [vmem:[#allocation1] ss:$9 sm:$0xff] %v298_v27 }
 0x136   : > { %304 = vst [vmem:[#allocation1 + $0x1] ss:$9 sm:$0xff] %v299_v28  ;;  %v323_v40 = vmul.f32 (%p239_p3), %v320_v38, %v320_v38 }
 0x137   : > { %306 = vst [vmem:[#allocation1 + $0x2] ss:$9 sm:$0xff] %v300_v29 }
 0x138   : > { %308 = vst [vmem:[#allocation1 + $0x3] ss:$9 sm:$0xff] %v301_v30 }
 0x13f   : > { %v309_v31 = vld [vmem:[#allocation1] sm:$0xff] }
 0x140   : > { %311 = vperm.xlu1 %551, %v309_v31  }
 0x1b2   : > { %v312_v33 = vpop.permute.xlu1 %311 }
 0x1b3   : > { %v313_v34 = vperm.slane %v312_v33, %v278_v21  ;;  %318 = sbr.rel (!%p239_p3) target bundleno = 478 (0x1de), region = 48 }
 0x1b5   : > { %v315_v35 = vadd.f32 %v313_v34, %v284_v32 }
 0x1b7   : > { %316 = vst.msk [vmem:[#allocation3] sm:$0x1] %vm282_vm2, %v315_v35 }
 0x1be   : > { %v321_v37 = vld [vmem:[#allocation3] sm:$0x1] }
 0x1bf   : > { %v322_v39 = vmul.f32 0.001953125, %v321_v37 }
 0x1c1   : > { %v324_v41 = vsub.f32 %v322_v39, %v323_v40 }
 0x1c3   : > { %v325_v42 = vadd.f32 1e-05, %v324_v41 }
 0x1c5   : > { %553 = vrsqrt.f32 %v325_v42  ;;  %vm332_vm3 = vweird.f32 %v325_v42 }
 0x1cb   : > { %v554_v43 = vpop.eup %553 }
 0x1cc   : > { %v327_v44 = vmul.f32 %v554_v43, %v325_v42  ;;  %vm333_vm4 = vweird.f32 %v554_v43 }
 0x1cd   : > { %vm334_vm5 = vmor %vm332_vm3, %vm333_vm4 }
 0x1ce   : > { %v328_v45 = vmul.f32 %v554_v43, %v327_v44 }
 0x1d0   : > { %v329_v46 = vmul.f32 0.5, %v328_v45 }
 0x1d2   : > { %v330_v47 = vsub.f32 1.5, %v329_v46 }
 0x1d4   : > { %v331_v48 = vmul.f32 %v554_v43, %v330_v47 }
 0x1d6   : > { %v335_v50 = vsel %vm334_vm5, %v554_v43, %v331_v48 }
 0x1d7   : > { %v337_v51 = vmul.f32 %v336_v49, %v335_v50 }
 0x1d9   : > { %338 = vst.msk [vmem:[#allocation9] sm:$0x1] %vm282_vm2, %v337_v51  ;;  %v340_v53 = vmul.f32 %v337_v51, %v320_v38 }
 0x1db   : > { %v341_v54 = vsub.f32 %v339_v52, %v340_v53 }
 0x1dd   : > { %342 = vst.msk [vmem:[#allocation10] sm:$0x1] %vm282_vm2, %v341_v54 }
 0x1de PF: > { %p872_p1 = scmp.eq.s32.totalorder %s448_s21, 1  ;;  %s351_s8 = sshll.u32 %s915_s3, 4  ;;  %s352_s8 = int_to_ptr.hbm [resolvable:$true] %s351_s8 }
 0x1df   : > { %s738_s9 = smov [#allocation9]   ;;  %s739_s12 = smov [#allocation10]  }
 0x1e0   : > { %s349_s10 = sshll.u32 %s738_s9, 4  ;;  %s361_s13 = sshll.u32 %s739_s12, 4  ;;  %s350_s10 = int_to_ptr.vmem [resolvable:$true] %s349_s10  ;;  %s362_s13 = int_to_ptr.vmem [resolvable:$true] %s361_s13 }
 0x1e1   : > { %476 = dma.vmem_to_hbm [thread:$0]  (%p872_p1), %s350_s10, 16, %s352_s8, [#allocation6]  }
 0x1e2   : > { %s363_s15 = sshll.u32 %s916_s4, 4  ;;  %s364_s15 = int_to_ptr.hbm [resolvable:$true] %s363_s15 }
 0x1e3   : > { %478 = dma.vmem_to_hbm [thread:$0]  (%p872_p1), %s362_s13, 16, %s364_s15, [#allocation11]  }
 0x1e4   : > { %704 = dma.done.wait (%p872_p1), [#allocation6], 16  }
 0x1e5   : > { %706 = vsyncadd (%p872_p1), [#allocation6], 4294967280 }
 0x1e6   : > { %708 = dma.done.wait (%p872_p1), [#allocation11], 16  }
 0x1e7   : > { %710 = vsyncadd (%p872_p1), [#allocation11], 4294967280 }
 0x1e8 PF: > { %s21_s20 = sadd.s32 1, %s733_s20   ;;  %s922_s15 = smov %s717_s16 }
 0x1e9   : > { %p18_p4 = scmp.ge.s32.totalorder %s21_s20, 4   ;;  %s923_s16 = smov %s721_s17 }
 0x1ea   : > { %s924_s17 = smov %s837_s11  ;;  %s925_s18 = smov %s729_s19 }
 0x1eb   : > { %s926_s19 = smov %s928_s30  ;;  %20 = sbr.rel (!%p18_p4) target bundleno = 7 (0x7), region = 95 }
 0x1f0   :  { %382 = vsyncpa [#allocation5], 1 }
 0x1f1   :  { %384 = vsyncpa [#allocation5 + $0x1], 1 }
 0x1f2   :  { %385 = vsyncpa [#allocation8], 1 }
 0x1f3   :  { %386 = vsyncpa [#allocation6], 1 }
 0x1f4   :  { %388 = vsyncpa [#allocation6 + $0x1], 1 }
 0x1f5   :  { %389 = vsyncpa [#allocation11], 1 }

</bundles_post_ra>
